<compile_context>
chip_gen: v7x
topology: tpu7x:2x2x1
jax: 0.10.0
libtpu: 0.0.40
codegen_flags: <defaults>
</compile_context>

<pallas_src>
import functools

import jax
import jax.numpy as jnp
from jax import lax
from jax.experimental import pallas as pl
from jax.experimental.pallas import tpu as pltpu


def _round_up(x, m):
    return ((x + m - 1) // m) * m


# ---------------------------------------------------------------------------
# In-kernel helpers
# ---------------------------------------------------------------------------
def _conv3x3_acc(act, w_ref, *, W, out_len, row_off, mask_l, mask_r):
    """3x3 'SAME' conv as 9 accumulating MXU matmuls on XLU-rolled activations.

    act:    (C_in, L)        activation strip, image rows flattened onto the
                             lane axis (L is a multiple of 128, so the lane
                             rolls are exact and relayout-free).
    w_ref:  (9, C_out, C_in) per-tap weight slabs, tap t = ky*3 + kx.

    out[:, i] = sum_{ky,kx} w[t] @ act[:, i + (row_off + ky - 1)*W + (kx - 1)]
    for i in [0, out_len).  Left/right image-border taps are zeroed with the
    lane-periodic masks; the mask depends only on the output column, so it
    commutes with the channel contraction and is applied once per kx group
    AFTER the matmul (2 selects per stage instead of 8 broadcast multiplies).
    No im2col scratch: rolls ride the otherwise-idle XLU slot while the MXU
    accumulates, and nothing is staged through the vst-limited store path.
    """
    L = act.shape[-1]
    C_out = w_ref.shape[1]
    acc = jnp.zeros((C_out, out_len), jnp.float32)
    for kx, mask in ((0, mask_l), (1, None), (2, mask_r)):
        part = jnp.zeros((C_out, out_len), jnp.float32)
        for ky in range(3):
            d = (row_off + ky - 1) * W + (kx - 1)      # flattened source offset
            src = act if d == 0 else pltpu.roll(act, shift=(-d) % L, axis=1)
            if out_len != L:
                src = src[:, :out_len]
            part = part + jnp.dot(w_ref[ky * 3 + kx], src,
                                  preferred_element_type=jnp.float32)
        if mask is not None:
            part = jnp.where(mask[:, :out_len], part, 0.0)
        acc = acc + part
    return acc


def _double_conv_kernel(x_hbm, w1_ref, b1_ref, w2_ref, b2_ref,
                        o_ref, xbuf_ref, a1_ref, *, W, tile_h, thw):
    cdt = xbuf_ref.dtype
    C1 = a1_ref.shape[0]
    L_pad = xbuf_ref.shape[-1]

    n = pl.program_id(0)
    s = pl.program_id(1)

    # ---- fetch this strip's input rows (+ 2-row halo each side) from HBM ---
    # The windows overlap between strips, so this is a manual, 128-lane-aligned
    # strided DMA rather than a BlockSpec block.
    start = s * thw
    if thw % 128 == 0:
        start = pl.multiple_of(start, 128)
    pltpu.sync_copy(x_hbm.at[n, :, pl.ds(start, L_pad)], xbuf_ref)
    # TODO(synk): double-buffer this strip fetch (make_async_copy into a
    # (2, Cin, L_pad) scratch) to overlap the HBM DMA with compute.

    # ---- lane-periodic left/right border masks, built in-kernel ------------
    col = lax.broadcasted_iota(jnp.int32, (1, L_pad), 1) % W
    mask_l = col > 0            # source column c-1 is inside the image
    mask_r = col < (W - 1)      # source column c+1 is inside the image

    # ---- stage 1: conv3x3 (+ folded BN) + ReLU over the strip + halo -------
    # Elementwise work (bias, ReLU) stays on the f32 accumulator; only the
    # matmul operands use the compute dtype (bf16-friendly on v5e).
    acc1 = _conv3x3_acc(xbuf_ref[...], w1_ref, W=W, out_len=L_pad,
                        row_off=0, mask_l=mask_l, mask_r=mask_r)
    a1_ref[...] = jnp.maximum(acc1 + b1_ref[...], 0.0).astype(cdt)

    # Stage-1 halo rows that fall OUTSIDE the image are the zero 'SAME'
    # padding stage 2 must see -> overwrite them with exact zeros.  Only the
    # first / last strip has such rows.
    @pl.when(s == 0)
    def _():
        a1_ref[:, 0:2 * W] = jnp.zeros((C1, 2 * W), cdt)

    @pl.when(s == pl.num_programs(1) - 1)
    def _():
        a1_ref[:, (tile_h + 2) * W:(tile_h + 4) * W] = (
            jnp.zeros((C1, 2 * W), cdt))

    # ---- stage 2: conv3x3 (+ folded BN) + ReLU for this output strip -------
    acc2 = _conv3x3_acc(a1_ref[...], w2_ref, W=W, out_len=thw,
                        row_off=2, mask_l=mask_l, mask_r=mask_r)
    o_ref[0] = jnp.maximum(acc2 + b2_ref[...], 0.0).astype(o_ref.dtype)


# ---------------------------------------------------------------------------
# Wrapper: BN folding, tile / VMEM policy, pallas_call
# ---------------------------------------------------------------------------
def _fold_bn(gamma, beta, mean, var, eps):
    scale = gamma / jnp.sqrt(var + eps)
    return scale, beta - mean * scale


def _vmem_budget_bytes():
    phys = 64 * 1024 * 1024                       # v7x per-TensorCore (worst case)
    try:
        info = pltpu.get_tpu_info()
        phys = int(getattr(info, "vmem_capacity_bytes", phys))
    except Exception:
        pass
    return int(phys * 0.75)                       # ~48 MiB v7x, ~96 MiB v5e/v6e


def _vmem_estimate_bytes(tile_h, W, Cin, C1, C2, cbytes, out_bytes):
    L_pad = _round_up((tile_h + 4) * W, 128)
    thw = tile_h * W
    est = Cin * L_pad * cbytes                    # input strip scratch
    est += C1 * L_pad * cbytes                    # stage-1 activation scratch
    est += 2 * C1 * L_pad * 4                     # stage-1 f32 acc + kx partial
    est += 2 * C2 * thw * 4                       # stage-2 f32 acc + kx partial
    est += 2 * max(Cin, C1) * L_pad * cbytes      # rolled-source temporaries
    est += 2 * C2 * thw * out_bytes               # double-buffered output block
    est += 2 * 9 * (C1 * Cin + C2 * C1) * cbytes + 8 * (C1 + C2)
    return int(est * 1.25)                        # headroom for compiler temps


def _pick_tile_h(H, W, Cin, C1, C2, cbytes, out_bytes, budget):
    cands = sorted({t for t in range(1, H + 1)
                    if H % t == 0 and ((t * W) % 128 == 0 or t == H)},
                   reverse=True)
    for t in cands:    # largest first: prefer a single strip whenever it fits
        if _vmem_estimate_bytes(t, W, Cin, C1, C2, cbytes, out_bytes) <= budget:
            return t
    return cands[-1]


def double_conv_pallas(x_nchw, params, *, compute_dtype=jnp.float32,
                       eps=1e-5, tile_h=None):
    """Forward pass matching PyTorch DoubleConv (eval-mode BN).  NCHW in/out."""
    N, Cin, H, W = x_nchw.shape
    C1 = params["w1"].shape[0]
    C2 = params["w2"].shape[0]
    HW = H * W
    cbytes = jnp.dtype(compute_dtype).itemsize
    out_bytes = jnp.dtype(x_nchw.dtype).itemsize

    # ---- fold eval-mode BatchNorm into the conv weights + per-channel bias -
    s1, b1 = _fold_bn(params["gamma1"], params["beta1"],
                      params["mean1"], params["var1"], eps)
    s2, b2 = _fold_bn(params["gamma2"], params["beta2"],
                      params["mean2"], params["var2"], eps)

    # OIHW -> (ky, kx, O, I) -> (9, O, I) per-tap slabs, BN scale folded in.
    w1_t = (jnp.transpose(params["w1"], (2, 3, 0, 1)).reshape(9, C1, Cin)
            * s1[None, :, None]).astype(compute_dtype)
    w2_t = (jnp.transpose(params["w2"], (2, 3, 0, 1)).reshape(9, C2, C1)
            * s2[None, :, None]).astype(compute_dtype)
    bias1 = b1.reshape(C1, 1).astype(jnp.float32)
    bias2 = b2.reshape(C2, 1).astype(jnp.float32)

    # ---- strip tiling: largest row strip that fits the per-chip VMEM budget
    budget = _vmem_budget_bytes()
    if tile_h is None:
        tile_h = _pick_tile_h(H, W, Cin, C1, C2, cbytes, out_bytes, budget)
    assert H % tile_h == 0 and ((tile_h * W) % 128 == 0 or tile_h == H), tile_h
    n_strips = H // tile_h
    thw = tile_h * W
    L = (tile_h + 4) * W                 # strip + 2-row halo each side
    L_pad = _round_up(L, 128)            # keep lane rolls on x128 widths

    # Channels on sublanes, flattened rows on the lane axis (free reshape).
    # 2 zero rows of vertical 'SAME' padding on each side, plus a small tail
    # so the last strip's 128-aligned halo fetch stays in bounds.  One cheap
    # pad of the input only; the old full-image (9, HW) f32 mask input is gone.
    x_flat = x_nchw.reshape(N, Cin, HW).astype(compute_dtype)
    x_pad = jnp.pad(x_flat, ((0, 0), (0, 0), (2 * W, 2 * W + (L_pad - L))))

    kernel = functools.partial(_double_conv_kernel, W=W, tile_h=tile_h, thw=thw)

    out_flat = pl.pallas_call(
        kernel,
        out_shape=jax.ShapeDtypeStruct((N, C2, HW), x_nchw.dtype),
        grid=(N, n_strips),
        in_specs=[
            # raw HBM ref: the strip+halo windows overlap, so they are fetched
            # with a manual DMA in the kernel instead of a BlockSpec block.
            pl.BlockSpec(memory_space=pl.ANY),
            # weights / biases: constant index maps -> resident across steps
            pl.BlockSpec((9, C1, Cin), lambda n, s: (0, 0, 0)),
            pl.BlockSpec((C1, 1), lambda n, s: (0, 0)),
            pl.BlockSpec((9, C2, C1), lambda n, s: (0, 0, 0)),
            pl.BlockSpec((C2, 1), lambda n, s: (0, 0)),
        ],
        # lane-dense output strip: last dim = tile_h*W (multiple of 128 lanes)
        out_specs=pl.BlockSpec((1, C2, thw), lambda n, s: (n, 0, s)),
        scratch_shapes=[
            pltpu.VMEM((Cin, L_pad), compute_dtype),   # input strip (+halo)
            pltpu.VMEM((C1, L_pad), compute_dtype),    # stage-1 activation
        ],
        compiler_params=pltpu.CompilerParams(
            # both axes are independent now that stage 1 is strip-local, so
            # megacore sharding of either axis duplicates no work
            dimension_semantics=("parallel", "parallel"),
            vmem_limit_bytes=budget,
        ),
    )(x_pad, w1_t, bias1, w2_t, bias2)

    return out_flat.reshape(N, C2, H, W)


# ---------------- pure-JAX reference (for correctness check) ----------------
def _ref_conv_bn_relu(x_nchw, w_oihw, gamma, beta, mean, var, eps=1e-5):
    y = lax.conv_general_dilated(
        x_nchw, w_oihw, window_strides=(1, 1), padding="SAME",
        dimension_numbers=("NCHW", "OIHW", "NCHW"))
    scale = (gamma / jnp.sqrt(var + eps)).reshape(1, -1, 1, 1)
    bias = (beta - mean * gamma / jnp.sqrt(var + eps)).reshape(1, -1, 1, 1)
    return jnp.maximum(y * scale + bias, 0.0)


def double_conv_ref(x_nchw, p):
    y = _ref_conv_bn_relu(x_nchw, p["w1"], p["gamma1"], p["beta1"],
                          p["mean1"], p["var1"])
    y = _ref_conv_bn_relu(y, p["w2"], p["gamma2"], p["beta2"],
                          p["mean2"], p["var2"])
    return y


def _make_params(key, cin, cout):
    ks = jax.random.split(key, 10)
    return {
        "w1": 0.1 * jax.random.normal(ks[0], (cout, cin, 3, 3), jnp.float32),
        "gamma1": 0.5 + jax.random.uniform(ks[1], (cout,), jnp.float32),
        "beta1": 0.1 * jax.random.normal(ks[2], (cout,), jnp.float32),
        "mean1": 0.1 * jax.random.normal(ks[3], (cout,), jnp.float32),
        "var1": 0.5 + jax.random.uniform(ks[4], (cout,), jnp.float32),
        "w2": 0.1 * jax.random.normal(ks[5], (cout, cout, 3, 3), jnp.float32),
        "gamma2": 0.5 + jax.random.uniform(ks[6], (cout,), jnp.float32),
        "beta2": 0.1 * jax.random.normal(ks[7], (cout,), jnp.float32),
        "mean2": 0.1 * jax.random.normal(ks[8], (cout,), jnp.float32),
        "var2": 0.5 + jax.random.uniform(ks[9], (cout,), jnp.float32),
    }


if __name__ == "__main__":
    key = jax.random.PRNGKey(0)
    k_p1, k_x1, k_p2, k_x2 = jax.random.split(key, 4)

    # ---- case 1: N=2, Cin=4, Cout=8, 16x16 ---------------------------------
    params1 = _make_params(k_p1, 4, 8)
    x1 = jax.random.normal(k_x1, (2, 4, 16, 16), jnp.float32)
    ref1 = jax.block_until_ready(double_conv_ref(x1, params1))

    # default tiling: single lane-dense strip (whole image fits the budget)
    out = jax.block_until_ready(jax.jit(double_conv_pallas)(x1, params1))
    assert out.shape == ref1.shape, out.shape
    assert jnp.allclose(out, ref1, atol=1e-4, rtol=1e-4), (
        float(jnp.max(jnp.abs(out - ref1))))

    # forced 2-strip tiling: exercises the first/last strip halo zeroing
    out = jax.block_until_ready(
        jax.jit(functools.partial(double_conv_pallas, tile_h=8))(x1, params1))
    assert jnp.allclose(out, ref1, atol=1e-4, rtol=1e-4), (
        float(jnp.max(jnp.abs(out - ref1))))

    # bf16 matmul operands (MXU rate, half the DMA bytes), f32 elementwise
    out = jax.block_until_ready(
        jax.jit(functools.partial(double_conv_pallas,
                                  compute_dtype=jnp.bfloat16))(x1, params1))
    assert jnp.allclose(out, ref1, atol=5e-2, rtol=5e-2), (
        float(jnp.max(jnp.abs(out - ref1))))

    # ---- case 2: 32x32, forced 4 strips -> interior strips with real halos -
    params2 = _make_params(k_p2, 4, 8)
    x2 = jax.random.normal(k_x2, (1, 4, 32, 32), jnp.float32)
    ref2 = jax.block_until_ready(double_conv_ref(x2, params2))
    out = jax.block_until_ready(
        jax.jit(functools.partial(double_conv_pallas, tile_h=8))(x2, params2))
    assert jnp.allclose(out, ref2, atol=1e-4, rtol=1e-4), (
        float(jnp.max(jnp.abs(out - ref2))))

    print("KERNEL_OK")
</pallas_src>

<mosaic_0001>
module attributes {stable_mosaic.version = 11 : i64} {
  func.func @_double_conv_kernel(%arg0: i32, %arg1: i32, %arg2: memref<2x4x384xf32, #tpu.memory_space<any>>, %arg3: memref<9x8x4xf32, #tpu.memory_space<vmem>>, %arg4: memref<8x1xf32, #tpu.memory_space<vmem>>, %arg5: memref<9x8x8xf32, #tpu.memory_space<vmem>>, %arg6: memref<8x1xf32, #tpu.memory_space<vmem>>, %arg7: memref<1x8x256xf32, #tpu.memory_space<vmem>>, %arg8: memref<4x384xf32, #tpu.memory_space<vmem>>, %arg9: memref<8x384xf32, #tpu.memory_space<vmem>>) attributes {dimension_semantics = [#tpu.dimension_semantics<parallel>, #tpu.dimension_semantics<parallel>], iteration_bounds = array<i64: 2, 1>, scalar_prefetch = 0 : i64, scratch_operands = 2 : i64, tpu.core_type = #tpu.core_type<tc>, window_params = [{}, {pipeline_mode = #tpu.pipeline_mode<synchronous>, transform_indices = @transform_1, window_bounds = array<i64: 9, 8, 4>}, {pipeline_mode = #tpu.pipeline_mode<synchronous>, transform_indices = @transform_2, window_bounds = array<i64: 8, 1>}, {pipeline_mode = #tpu.pipeline_mode<synchronous>, transform_indices = @transform_3, window_bounds = array<i64: 9, 8, 8>}, {pipeline_mode = #tpu.pipeline_mode<synchronous>, transform_indices = @transform_4, window_bounds = array<i64: 8, 1>}, {transform_indices = @transform_5, window_bounds = array<i64: 1, 8, 256>}]} {
    %c256_i32 = arith.constant 256 : i32
    %0 = arith.muli %arg1, %c256_i32 : i32
    %1 = tpu.assume_multiple %0, 128 : i32
    "tpu.region"() ({
      %175 = tpu.sem_alloc : memref<!tpu.dma_semaphore, #tpu.memory_space<semaphore_mem>>
      %c0_i32_103 = arith.constant 0 : i32
      %176 = tpu.memref_slice %arg2[%arg0, %c0_i32_103, %1] : memref<2x4x384xf32, #tpu.memory_space<any>> -> memref<1x4x384xf32, #tpu.memory_space<any>>
      %177 = tpu.memref_squeeze %176 : memref<1x4x384xf32, #tpu.memory_space<any>> -> memref<4x384xf32, #tpu.memory_space<any>>
      tpu.enqueue_dma source(%177 : memref<4x384xf32, #tpu.memory_space<any>>) target(%arg8 : memref<4x384xf32, #tpu.memory_space<vmem>>) target_semaphore(%175 : memref<!tpu.dma_semaphore, #tpu.memory_space<semaphore_mem>>)
      %c0_i32_104 = arith.constant 0 : i32
      %178 = tpu.memref_slice %arg2[%arg0, %c0_i32_104, %1] : memref<2x4x384xf32, #tpu.memory_space<any>> -> memref<1x4x384xf32, #tpu.memory_space<any>>
      %179 = tpu.memref_squeeze %178 : memref<1x4x384xf32, #tpu.memory_space<any>> -> memref<4x384xf32, #tpu.memory_space<any>>
      tpu.wait_dma2 semaphore(%175 : memref<!tpu.dma_semaphore, #tpu.memory_space<semaphore_mem>>) src(%179 : memref<4x384xf32, #tpu.memory_space<any>>) dst(%arg8 : memref<4x384xf32, #tpu.memory_space<vmem>>)
      tpu.yield
    }) : () -> ()
    %2 = tpu.iota {dimensions = array<i32: 1>} : vector<1x384xi32>
    %c16_i32 = arith.constant 16 : i32
    %c0_i32 = arith.constant 0 : i32
    %3 = arith.cmpi eq, %c16_i32, %c0_i32 : i32
    %c1_i32 = arith.constant 1 : i32
    %4 = arith.select %3, %c1_i32, %c16_i32 : i32
    %5 = vector.broadcast %4 : i32 to vector<1x384xi32>
    %6 = arith.remsi %2, %5 : vector<1x384xi32>
    %c0_i32_0 = arith.constant 0 : i32
    %7 = vector.broadcast %c0_i32_0 : i32 to vector<1x384xi32>
    %8 = arith.cmpi ne, %6, %7 : vector<1x384xi32>
    %c0_i32_1 = arith.constant 0 : i32
    %9 = vector.broadcast %c0_i32_1 : i32 to vector<1x384xi32>
    %10 = arith.cmpi slt, %6, %9 : vector<1x384xi32>
    %c0_i32_2 = arith.constant 0 : i32
    %11 = arith.cmpi slt, %4, %c0_i32_2 : i32
    %12 = vector.broadcast %11 : i1 to vector<1x384xi1>
    %13 = vector.broadcast %12 : vector<1x384xi1> to vector<1x384xi1>
    %14 = arith.xori %10, %13 : vector<1x384xi1>
    %15 = arith.andi %14, %8 : vector<1x384xi1>
    %16 = vector.broadcast %4 : i32 to vector<1x384xi32>
    %17 = arith.addi %6, %16 : vector<1x384xi32>
    %18 = arith.select %15, %17, %6 : vector<1x384xi1>, vector<1x384xi32>
    %c0_i32_3 = arith.constant 0 : i32
    %19 = vector.broadcast %c0_i32_3 : i32 to vector<1x384xi32>
    %20 = arith.cmpi sgt, %18, %19 : vector<1x384xi32>
    %c15_i32 = arith.constant 15 : i32
    %21 = vector.broadcast %c15_i32 : i32 to vector<1x384xi32>
    %22 = arith.cmpi slt, %18, %21 : vector<1x384xi32>
    %c0 = arith.constant 0 : index
    %c0_4 = arith.constant 0 : index
    %23 = vector.load %arg8[%c0, %c0_4] : memref<4x384xf32, #tpu.memory_space<vmem>>, vector<4x384xf32>
    %cst = arith.constant 0.000000e+00 : f32
    %24 = vector.broadcast %cst : f32 to vector<8x384xf32>
    %cst_5 = arith.constant 0.000000e+00 : f32
    %25 = vector.broadcast %cst_5 : f32 to vector<8x384xf32>
    %c17_i32 = arith.constant 17 : i32
    %26 = tpu.dynamic_rotate %23 by %c17_i32 dim 1 : vector<4x384xf32>, i32 -> vector<4x384xf32>
    %c0_6 = arith.constant 0 : index
    %c0_7 = arith.constant 0 : index
    %c0_8 = arith.constant 0 : index
    %27 = vector.load %arg3[%c0_6, %c0_7, %c0_8] : memref<9x8x4xf32, #tpu.memory_space<vmem>>, vector<1x8x4xf32>
    %28 = vector.shape_cast %27 : vector<1x8x4xf32> to vector<8x4xf32>
    %cst_9 = arith.constant dense<0.000000e+00> : vector<8x384xf32>
    %29 = tpu.matmul %28, %26, %cst_9 {dimension_numbers = #tpu.dot_dimension_numbers<[1], [0], [0], [1], [0, 0, 1, 1], [], []>} : vector<8x4xf32>, vector<4x384xf32>, vector<8x384xf32> -> vector<8x384xf32>
    %30 = arith.addf %25, %29 : vector<8x384xf32>
    %c1_i32_10 = arith.constant 1 : i32
    %31 = tpu.dynamic_rotate %23 by %c1_i32_10 dim 1 : vector<4x384xf32>, i32 -> vector<4x384xf32>
    %c3 = arith.constant 3 : index
    %c0_11 = arith.constant 0 : index
    %c0_12 = arith.constant 0 : index
    %32 = vector.load %arg3[%c3, %c0_11, %c0_12] : memref<9x8x4xf32, #tpu.memory_space<vmem>>, vector<1x8x4xf32>
    %33 = vector.shape_cast %32 : vector<1x8x4xf32> to vector<8x4xf32>
    %cst_13 = arith.constant dense<0.000000e+00> : vector<8x384xf32>
    %34 = tpu.matmul %33, %31, %cst_13 {dimension_numbers = #tpu.dot_dimension_numbers<[1], [0], [0], [1], [0, 0, 1, 1], [], []>} : vector<8x4xf32>, vector<4x384xf32>, vector<8x384xf32> -> vector<8x384xf32>
    %35 = arith.addf %30, %34 : vector<8x384xf32>
    %c369_i32 = arith.constant 369 : i32
    %36 = tpu.dynamic_rotate %23 by %c369_i32 dim 1 : vector<4x384xf32>, i32 -> vector<4x384xf32>
    %c6 = arith.constant 6 : index
    %c0_14 = arith.constant 0 : index
    %c0_15 = arith.constant 0 : index
    %37 = vector.load %arg3[%c6, %c0_14, %c0_15] : memref<9x8x4xf32, #tpu.memory_space<vmem>>, vector<1x8x4xf32>
    %38 = vector.shape_cast %37 : vector<1x8x4xf32> to vector<8x4xf32>
    %cst_16 = arith.constant dense<0.000000e+00> : vector<8x384xf32>
    %39 = tpu.matmul %38, %36, %cst_16 {dimension_numbers = #tpu.dot_dimension_numbers<[1], [0], [0], [1], [0, 0, 1, 1], [], []>} : vector<8x4xf32>, vector<4x384xf32>, vector<8x384xf32> -> vector<8x384xf32>
    %40 = arith.addf %35, %39 : vector<8x384xf32>
    %cst_17 = arith.constant 0.000000e+00 : f32
    %41 = vector.shape_cast %20 : vector<1x384xi1> to vector<1x384xi1>
    %42 = vector.broadcast %41 : vector<1x384xi1> to vector<8x384xi1>
    %43 = vector.broadcast %cst_17 : f32 to vector<8x384xf32>
    %44 = arith.select %42, %40, %43 : vector<8x384xi1>, vector<8x384xf32>
    %45 = arith.addf %24, %44 : vector<8x384xf32>
    %cst_18 = arith.constant 0.000000e+00 : f32
    %46 = vector.broadcast %cst_18 : f32 to vector<8x384xf32>
    %c16_i32_19 = arith.constant 16 : i32
    %47 = tpu.dynamic_rotate %23 by %c16_i32_19 dim 1 : vector<4x384xf32>, i32 -> vector<4x384xf32>
    %c1 = arith.constant 1 : index
    %c0_20 = arith.constant 0 : index
    %c0_21 = arith.constant 0 : index
    %48 = vector.load %arg3[%c1, %c0_20, %c0_21] : memref<9x8x4xf32, #tpu.memory_space<vmem>>, vector<1x8x4xf32>
    %49 = vector.shape_cast %48 : vector<1x8x4xf32> to vector<8x4xf32>
    %cst_22 = arith.constant dense<0.000000e+00> : vector<8x384xf32>
    %50 = tpu.matmul %49, %47, %cst_22 {dimension_numbers = #tpu.dot_dimension_numbers<[1], [0], [0], [1], [0, 0, 1, 1], [], []>} : vector<8x4xf32>, vector<4x384xf32>, vector<8x384xf32> -> vector<8x384xf32>
    %51 = arith.addf %46, %50 : vector<8x384xf32>
    %c4 = arith.constant 4 : index
    %c0_23 = arith.constant 0 : index
    %c0_24 = arith.constant 0 : index
    %52 = vector.load %arg3[%c4, %c0_23, %c0_24] : memref<9x8x4xf32, #tpu.memory_space<vmem>>, vector<1x8x4xf32>
    %53 = vector.shape_cast %52 : vector<1x8x4xf32> to vector<8x4xf32>
    %cst_25 = arith.constant dense<0.000000e+00> : vector<8x384xf32>
    %54 = tpu.matmul %53, %23, %cst_25 {dimension_numbers = #tpu.dot_dimension_numbers<[1], [0], [0], [1], [0, 0, 1, 1], [], []>} : vector<8x4xf32>, vector<4x384xf32>, vector<8x384xf32> -> vector<8x384xf32>
    %55 = arith.addf %51, %54 : vector<8x384xf32>
    %c368_i32 = arith.constant 368 : i32
    %56 = tpu.dynamic_rotate %23 by %c368_i32 dim 1 : vector<4x384xf32>, i32 -> vector<4x384xf32>
    %c7 = arith.constant 7 : index
    %c0_26 = arith.constant 0 : index
    %c0_27 = arith.constant 0 : index
    %57 = vector.load %arg3[%c7, %c0_26, %c0_27] : memref<9x8x4xf32, #tpu.memory_space<vmem>>, vector<1x8x4xf32>
    %58 = vector.shape_cast %57 : vector<1x8x4xf32> to vector<8x4xf32>
    %cst_28 = arith.constant dense<0.000000e+00> : vector<8x384xf32>
    %59 = tpu.matmul %58, %56, %cst_28 {dimension_numbers = #tpu.dot_dimension_numbers<[1], [0], [0], [1], [0, 0, 1, 1], [], []>} : vector<8x4xf32>, vector<4x384xf32>, vector<8x384xf32> -> vector<8x384xf32>
    %60 = arith.addf %55, %59 : vector<8x384xf32>
    %61 = arith.addf %45, %60 : vector<8x384xf32>
    %cst_29 = arith.constant 0.000000e+00 : f32
    %62 = vector.broadcast %cst_29 : f32 to vector<8x384xf32>
    %c15_i32_30 = arith.constant 15 : i32
    %63 = tpu.dynamic_rotate %23 by %c15_i32_30 dim 1 : vector<4x384xf32>, i32 -> vector<4x384xf32>
    %c2 = arith.constant 2 : index
    %c0_31 = arith.constant 0 : index
    %c0_32 = arith.constant 0 : index
    %64 = vector.load %arg3[%c2, %c0_31, %c0_32] : memref<9x8x4xf32, #tpu.memory_space<vmem>>, vector<1x8x4xf32>
    %65 = vector.shape_cast %64 : vector<1x8x4xf32> to vector<8x4xf32>
    %cst_33 = arith.constant dense<0.000000e+00> : vector<8x384xf32>
    %66 = tpu.matmul %65, %63, %cst_33 {dimension_numbers = #tpu.dot_dimension_numbers<[1], [0], [0], [1], [0, 0, 1, 1], [], []>} : vector<8x4xf32>, vector<4x384xf32>, vector<8x384xf32> -> vector<8x384xf32>
    %67 = arith.addf %62, %66 : vector<8x384xf32>
    %c383_i32 = arith.constant 383 : i32
    %68 = tpu.dynamic_rotate %23 by %c383_i32 dim 1 : vector<4x384xf32>, i32 -> vector<4x384xf32>
    %c5 = arith.constant 5 : index
    %c0_34 = arith.constant 0 : index
    %c0_35 = arith.constant 0 : index
    %69 = vector.load %arg3[%c5, %c0_34, %c0_35] : memref<9x8x4xf32, #tpu.memory_space<vmem>>, vector<1x8x4xf32>
    %70 = vector.shape_cast %69 : vector<1x8x4xf32> to vector<8x4xf32>
    %cst_36 = arith.constant dense<0.000000e+00> : vector<8x384xf32>
    %71 = tpu.matmul %70, %68, %cst_36 {dimension_numbers = #tpu.dot_dimension_numbers<[1], [0], [0], [1], [0, 0, 1, 1], [], []>} : vector<8x4xf32>, vector<4x384xf32>, vector<8x384xf32> -> vector<8x384xf32>
    %72 = arith.addf %67, %71 : vector<8x384xf32>
    %c367_i32 = arith.constant 367 : i32
    %73 = tpu.dynamic_rotate %23 by %c367_i32 dim 1 : vector<4x384xf32>, i32 -> vector<4x384xf32>
    %c8 = arith.constant 8 : index
    %c0_37 = arith.constant 0 : index
    %c0_38 = arith.constant 0 : index
    %74 = vector.load %arg3[%c8, %c0_37, %c0_38] : memref<9x8x4xf32, #tpu.memory_space<vmem>>, vector<1x8x4xf32>
    %75 = vector.shape_cast %74 : vector<1x8x4xf32> to vector<8x4xf32>
    %cst_39 = arith.constant dense<0.000000e+00> : vector<8x384xf32>
    %76 = tpu.matmul %75, %73, %cst_39 {dimension_numbers = #tpu.dot_dimension_numbers<[1], [0], [0], [1], [0, 0, 1, 1], [], []>} : vector<8x4xf32>, vector<4x384xf32>, vector<8x384xf32> -> vector<8x384xf32>
    %77 = arith.addf %72, %76 : vector<8x384xf32>
    %cst_40 = arith.constant 0.000000e+00 : f32
    %78 = vector.shape_cast %22 : vector<1x384xi1> to vector<1x384xi1>
    %79 = vector.broadcast %78 : vector<1x384xi1> to vector<8x384xi1>
    %80 = vector.broadcast %cst_40 : f32 to vector<8x384xf32>
    %81 = arith.select %79, %77, %80 : vector<8x384xi1>, vector<8x384xf32>
    %82 = arith.addf %61, %81 : vector<8x384xf32>
    %c0_41 = arith.constant 0 : index
    %c0_42 = arith.constant 0 : index
    %83 = vector.load %arg4[%c0_41, %c0_42] : memref<8x1xf32, #tpu.memory_space<vmem>>, vector<8x1xf32>
    %84 = vector.broadcast %83 : vector<8x1xf32> to vector<8x384xf32>
    %85 = arith.addf %82, %84 : vector<8x384xf32>
    %cst_43 = arith.constant 0.000000e+00 : f32
    %86 = vector.broadcast %cst_43 : f32 to vector<8x384xf32>
    %87 = arith.maximumf %85, %86 : vector<8x384xf32>
    %c0_44 = arith.constant 0 : index
    %c0_45 = arith.constant 0 : index
    %88 = vector.load %arg9[%c0_44, %c0_45] : memref<8x384xf32, #tpu.memory_space<vmem>>, vector<8x384xf32>
    tpu.vector_store %arg9[%c0_44, %c0_45], %87 {strides = array<i32>} : memref<8x384xf32, #tpu.memory_space<vmem>>, vector<8x384xf32>,
    %c0_i32_46 = arith.constant 0 : i32
    %89 = arith.cmpi eq, %arg1, %c0_i32_46 : i32
    %90 = arith.extui %89 : i1 to i32
    %c0_i32_47 = arith.constant 0 : i32
    %91 = arith.cmpi ne, %90, %c0_i32_47 : i32
    scf.if %91 {
      %cst_103 = arith.constant 0.000000e+00 : f32
      %175 = vector.broadcast %cst_103 : f32 to vector<8x32xf32>
      %c0_104 = arith.constant 0 : index
      %c0_105 = arith.constant 0 : index
      %176 = vector.load %arg9[%c0_104, %c0_105] : memref<8x384xf32, #tpu.memory_space<vmem>>, vector<8x32xf32>
      tpu.vector_store %arg9[%c0_104, %c0_105], %175 {strides = array<i32>} : memref<8x384xf32, #tpu.memory_space<vmem>>, vector<8x32xf32>,
    } else {
    }
    %c0_i32_48 = arith.constant 0 : i32
    %92 = arith.cmpi eq, %arg1, %c0_i32_48 : i32
    %93 = arith.extui %92 : i1 to i32
    %c0_i32_49 = arith.constant 0 : i32
    %94 = arith.cmpi ne, %93, %c0_i32_49 : i32
    scf.if %94 {
      %cst_103 = arith.constant 0.000000e+00 : f32
      %175 = vector.broadcast %cst_103 : f32 to vector<8x32xf32>
      %c0_104 = arith.constant 0 : index
      %c288 = arith.constant 288 : index
      %176 = vector.load %arg9[%c0_104, %c288] : memref<8x384xf32, #tpu.memory_space<vmem>>, vector<8x32xf32>
      tpu.vector_store %arg9[%c0_104, %c288], %175 {strides = array<i32>} : memref<8x384xf32, #tpu.memory_space<vmem>>, vector<8x32xf32>,
    } else {
    }
    %c0_50 = arith.constant 0 : index
    %c0_51 = arith.constant 0 : index
    %95 = vector.load %arg9[%c0_50, %c0_51] : memref<8x384xf32, #tpu.memory_space<vmem>>, vector<8x384xf32>
    %cst_52 = arith.constant 0.000000e+00 : f32
    %96 = vector.broadcast %cst_52 : f32 to vector<8x256xf32>
    %cst_53 = arith.constant 0.000000e+00 : f32
    %97 = vector.broadcast %cst_53 : f32 to vector<8x256xf32>
    %c369_i32_54 = arith.constant 369 : i32
    %98 = tpu.dynamic_rotate %95 by %c369_i32_54 dim 1 : vector<8x384xf32>, i32 -> vector<8x384xf32>
    %99 = vector.extract_strided_slice %98 {offsets = [0, 0], sizes = [8, 256], strides = [1, 1]} : vector<8x384xf32> to vector<8x256xf32>
    %c0_55 = arith.constant 0 : index
    %c0_56 = arith.constant 0 : index
    %c0_57 = arith.constant 0 : index
    %100 = vector.load %arg5[%c0_55, %c0_56, %c0_57] : memref<9x8x8xf32, #tpu.memory_space<vmem>>, vector<1x8x8xf32>
    %101 = vector.shape_cast %100 : vector<1x8x8xf32> to vector<8x8xf32>
    %cst_58 = arith.constant dense<0.000000e+00> : vector<8x256xf32>
    %102 = tpu.matmul %101, %99, %cst_58 {dimension_numbers = #tpu.dot_dimension_numbers<[1], [0], [0], [1], [0, 0, 1, 1], [], []>} : vector<8x8xf32>, vector<8x256xf32>, vector<8x256xf32> -> vector<8x256xf32>
    %103 = arith.addf %97, %102 : vector<8x256xf32>
    %c353_i32 = arith.constant 353 : i32
    %104 = tpu.dynamic_rotate %95 by %c353_i32 dim 1 : vector<8x384xf32>, i32 -> vector<8x384xf32>
    %105 = vector.extract_strided_slice %104 {offsets = [0, 0], sizes = [8, 256], strides = [1, 1]} : vector<8x384xf32> to vector<8x256xf32>
    %c3_59 = arith.constant 3 : index
    %c0_60 = arith.constant 0 : index
    %c0_61 = arith.constant 0 : index
    %106 = vector.load %arg5[%c3_59, %c0_60, %c0_61] : memref<9x8x8xf32, #tpu.memory_space<vmem>>, vector<1x8x8xf32>
    %107 = vector.shape_cast %106 : vector<1x8x8xf32> to vector<8x8xf32>
    %cst_62 = arith.constant dense<0.000000e+00> : vector<8x256xf32>
    %108 = tpu.matmul %107, %105, %cst_62 {dimension_numbers = #tpu.dot_dimension_numbers<[1], [0], [0], [1], [0, 0, 1, 1], [], []>} : vector<8x8xf32>, vector<8x256xf32>, vector<8x256xf32> -> vector<8x256xf32>
    %109 = arith.addf %103, %108 : vector<8x256xf32>
    %c337_i32 = arith.constant 337 : i32
    %110 = tpu.dynamic_rotate %95 by %c337_i32 dim 1 : vector<8x384xf32>, i32 -> vector<8x384xf32>
    %111 = vector.extract_strided_slice %110 {offsets = [0, 0], sizes = [8, 256], strides = [1, 1]} : vector<8x384xf32> to vector<8x256xf32>
    %c6_63 = arith.constant 6 : index
    %c0_64 = arith.constant 0 : index
    %c0_65 = arith.constant 0 : index
    %112 = vector.load %arg5[%c6_63, %c0_64, %c0_65] : memref<9x8x8xf32, #tpu.memory_space<vmem>>, vector<1x8x8xf32>
    %113 = vector.shape_cast %112 : vector<1x8x8xf32> to vector<8x8xf32>
    %cst_66 = arith.constant dense<0.000000e+00> : vector<8x256xf32>
    %114 = tpu.matmul %113, %111, %cst_66 {dimension_numbers = #tpu.dot_dimension_numbers<[1], [0], [0], [1], [0, 0, 1, 1], [], []>} : vector<8x8xf32>, vector<8x256xf32>, vector<8x256xf32> -> vector<8x256xf32>
    %115 = arith.addf %109, %114 : vector<8x256xf32>
    %116 = vector.extract_strided_slice %20 {offsets = [0, 0], sizes = [1, 256], strides = [1, 1]} : vector<1x384xi1> to vector<1x256xi1>
    %cst_67 = arith.constant 0.000000e+00 : f32
    %117 = vector.shape_cast %116 : vector<1x256xi1> to vector<1x256xi1>
    %118 = vector.broadcast %117 : vector<1x256xi1> to vector<8x256xi1>
    %119 = vector.broadcast %cst_67 : f32 to vector<8x256xf32>
    %120 = arith.select %118, %115, %119 : vector<8x256xi1>, vector<8x256xf32>
    %121 = arith.addf %96, %120 : vector<8x256xf32>
    %cst_68 = arith.constant 0.000000e+00 : f32
    %122 = vector.broadcast %cst_68 : f32 to vector<8x256xf32>
    %c368_i32_69 = arith.constant 368 : i32
    %123 = tpu.dynamic_rotate %95 by %c368_i32_69 dim 1 : vector<8x384xf32>, i32 -> vector<8x384xf32>
    %124 = vector.extract_strided_slice %123 {offsets = [0, 0], sizes = [8, 256], strides = [1, 1]} : vector<8x384xf32> to vector<8x256xf32>
    %c1_70 = arith.constant 1 : index
    %c0_71 = arith.constant 0 : index
    %c0_72 = arith.constant 0 : index
    %125 = vector.load %arg5[%c1_70, %c0_71, %c0_72] : memref<9x8x8xf32, #tpu.memory_space<vmem>>, vector<1x8x8xf32>
    %126 = vector.shape_cast %125 : vector<1x8x8xf32> to vector<8x8xf32>
    %cst_73 = arith.constant dense<0.000000e+00> : vector<8x256xf32>
    %127 = tpu.matmul %126, %124, %cst_73 {dimension_numbers = #tpu.dot_dimension_numbers<[1], [0], [0], [1], [0, 0, 1, 1], [], []>} : vector<8x8xf32>, vector<8x256xf32>, vector<8x256xf32> -> vector<8x256xf32>
    %128 = arith.addf %122, %127 : vector<8x256xf32>
    %c352_i32 = arith.constant 352 : i32
    %129 = tpu.dynamic_rotate %95 by %c352_i32 dim 1 : vector<8x384xf32>, i32 -> vector<8x384xf32>
    %130 = vector.extract_strided_slice %129 {offsets = [0, 0], sizes = [8, 256], strides = [1, 1]} : vector<8x384xf32> to vector<8x256xf32>
    %c4_74 = arith.constant 4 : index
    %c0_75 = arith.constant 0 : index
    %c0_76 = arith.constant 0 : index
    %131 = vector.load %arg5[%c4_74, %c0_75, %c0_76] : memref<9x8x8xf32, #tpu.memory_space<vmem>>, vector<1x8x8xf32>
    %132 = vector.shape_cast %131 : vector<1x8x8xf32> to vector<8x8xf32>
    %cst_77 = arith.constant dense<0.000000e+00> : vector<8x256xf32>
    %133 = tpu.matmul %132, %130, %cst_77 {dimension_numbers = #tpu.dot_dimension_numbers<[1], [0], [0], [1], [0, 0, 1, 1], [], []>} : vector<8x8xf32>, vector<8x256xf32>, vector<8x256xf32> -> vector<8x256xf32>
    %134 = arith.addf %128, %133 : vector<8x256xf32>
    %c336_i32 = arith.constant 336 : i32
    %135 = tpu.dynamic_rotate %95 by %c336_i32 dim 1 : vector<8x384xf32>, i32 -> vector<8x384xf32>
    %136 = vector.extract_strided_slice %135 {offsets = [0, 0], sizes = [8, 256], strides = [1, 1]} : vector<8x384xf32> to vector<8x256xf32>
    %c7_78 = arith.constant 7 : index
    %c0_79 = arith.constant 0 : index
    %c0_80 = arith.constant 0 : index
    %137 = vector.load %arg5[%c7_78, %c0_79, %c0_80] : memref<9x8x8xf32, #tpu.memory_space<vmem>>, vector<1x8x8xf32>
    %138 = vector.shape_cast %137 : vector<1x8x8xf32> to vector<8x8xf32>
    %cst_81 = arith.constant dense<0.000000e+00> : vector<8x256xf32>
    %139 = tpu.matmul %138, %136, %cst_81 {dimension_numbers = #tpu.dot_dimension_numbers<[1], [0], [0], [1], [0, 0, 1, 1], [], []>} : vector<8x8xf32>, vector<8x256xf32>, vector<8x256xf32> -> vector<8x256xf32>
    %140 = arith.addf %134, %139 : vector<8x256xf32>
    %141 = arith.addf %121, %140 : vector<8x256xf32>
    %cst_82 = arith.constant 0.000000e+00 : f32
    %142 = vector.broadcast %cst_82 : f32 to vector<8x256xf32>
    %c367_i32_83 = arith.constant 367 : i32
    %143 = tpu.dynamic_rotate %95 by %c367_i32_83 dim 1 : vector<8x384xf32>, i32 -> vector<8x384xf32>
    %144 = vector.extract_strided_slice %143 {offsets = [0, 0], sizes = [8, 256], strides = [1, 1]} : vector<8x384xf32> to vector<8x256xf32>
    %c2_84 = arith.constant 2 : index
    %c0_85 = arith.constant 0 : index
    %c0_86 = arith.constant 0 : index
    %145 = vector.load %arg5[%c2_84, %c0_85, %c0_86] : memref<9x8x8xf32, #tpu.memory_space<vmem>>, vector<1x8x8xf32>
    %146 = vector.shape_cast %145 : vector<1x8x8xf32> to vector<8x8xf32>
    %cst_87 = arith.constant dense<0.000000e+00> : vector<8x256xf32>
    %147 = tpu.matmul %146, %144, %cst_87 {dimension_numbers = #tpu.dot_dimension_numbers<[1], [0], [0], [1], [0, 0, 1, 1], [], []>} : vector<8x8xf32>, vector<8x256xf32>, vector<8x256xf32> -> vector<8x256xf32>
    %148 = arith.addf %142, %147 : vector<8x256xf32>
    %c351_i32 = arith.constant 351 : i32
    %149 = tpu.dynamic_rotate %95 by %c351_i32 dim 1 : vector<8x384xf32>, i32 -> vector<8x384xf32>
    %150 = vector.extract_strided_slice %149 {offsets = [0, 0], sizes = [8, 256], strides = [1, 1]} : vector<8x384xf32> to vector<8x256xf32>
    %c5_88 = arith.constant 5 : index
    %c0_89 = arith.constant 0 : index
    %c0_90 = arith.constant 0 : index
    %151 = vector.load %arg5[%c5_88, %c0_89, %c0_90] : memref<9x8x8xf32, #tpu.memory_space<vmem>>, vector<1x8x8xf32>
    %152 = vector.shape_cast %151 : vector<1x8x8xf32> to vector<8x8xf32>
    %cst_91 = arith.constant dense<0.000000e+00> : vector<8x256xf32>
    %153 = tpu.matmul %152, %150, %cst_91 {dimension_numbers = #tpu.dot_dimension_numbers<[1], [0], [0], [1], [0, 0, 1, 1], [], []>} : vector<8x8xf32>, vector<8x256xf32>, vector<8x256xf32> -> vector<8x256xf32>
    %154 = arith.addf %148, %153 : vector<8x256xf32>
    %c335_i32 = arith.constant 335 : i32
    %155 = tpu.dynamic_rotate %95 by %c335_i32 dim 1 : vector<8x384xf32>, i32 -> vector<8x384xf32>
    %156 = vector.extract_strided_slice %155 {offsets = [0, 0], sizes = [8, 256], strides = [1, 1]} : vector<8x384xf32> to vector<8x256xf32>
    %c8_92 = arith.constant 8 : index
    %c0_93 = arith.constant 0 : index
    %c0_94 = arith.constant 0 : index
    %157 = vector.load %arg5[%c8_92, %c0_93, %c0_94] : memref<9x8x8xf32, #tpu.memory_space<vmem>>, vector<1x8x8xf32>
    %158 = vector.shape_cast %157 : vector<1x8x8xf32> to vector<8x8xf32>
    %cst_95 = arith.constant dense<0.000000e+00> : vector<8x256xf32>
    %159 = tpu.matmul %158, %156, %cst_95 {dimension_numbers = #tpu.dot_dimension_numbers<[1], [0], [0], [1], [0, 0, 1, 1], [], []>} : vector<8x8xf32>, vector<8x256xf32>, vector<8x256xf32> -> vector<8x256xf32>
    %160 = arith.addf %154, %159 : vector<8x256xf32>
    %161 = vector.extract_strided_slice %22 {offsets = [0, 0], sizes = [1, 256], strides = [1, 1]} : vector<1x384xi1> to vector<1x256xi1>
    %cst_96 = arith.constant 0.000000e+00 : f32
    %162 = vector.shape_cast %161 : vector<1x256xi1> to vector<1x256xi1>
    %163 = vector.broadcast %162 : vector<1x256xi1> to vector<8x256xi1>
    %164 = vector.broadcast %cst_96 : f32 to vector<8x256xf32>
    %165 = arith.select %163, %160, %164 : vector<8x256xi1>, vector<8x256xf32>
    %166 = arith.addf %141, %165 : vector<8x256xf32>
    %c0_97 = arith.constant 0 : index
    %c0_98 = arith.constant 0 : index
    %167 = vector.load %arg6[%c0_97, %c0_98] : memref<8x1xf32, #tpu.memory_space<vmem>>, vector<8x1xf32>
    %168 = vector.broadcast %167 : vector<8x1xf32> to vector<8x256xf32>
    %169 = arith.addf %166, %168 : vector<8x256xf32>
    %cst_99 = arith.constant 0.000000e+00 : f32
    %170 = vector.broadcast %cst_99 : f32 to vector<8x256xf32>
    %171 = arith.maximumf %169, %170 : vector<8x256xf32>
    %c0_100 = arith.constant 0 : index
    %c0_101 = arith.constant 0 : index
    %c0_102 = arith.constant 0 : index
    %172 = vector.load %arg7[%c0_100, %c0_101, %c0_102] : memref<1x8x256xf32, #tpu.memory_space<vmem>>, vector<1x8x256xf32>
    %173 = vector.shape_cast %172 : vector<1x8x256xf32> to vector<8x256xf32>
    %174 = vector.shape_cast %171 : vector<8x256xf32> to vector<1x8x256xf32>
    tpu.vector_store %arg7[%c0_100, %c0_101, %c0_102], %174 {strides = array<i32>} : memref<1x8x256xf32, #tpu.memory_space<vmem>>, vector<1x8x256xf32>,
    return
  }
  func.func @transform_1(%arg0: i32, %arg1: i32) -> (i32, i32, i32) {
    %c0_i32 = arith.constant 0 : i32
    %c0_i32_0 = arith.constant 0 : i32
    %c0_i32_1 = arith.constant 0 : i32
    %c0_i32_2 = arith.constant 0 : i32
    return %c0_i32, %c0_i32_0, %c0_i32_1 : i32, i32, i32
  }
  func.func @transform_2(%arg0: i32, %arg1: i32) -> (i32, i32) {
    %c0_i32 = arith.constant 0 : i32
    %c0_i32_0 = arith.constant 0 : i32
    %c0_i32_1 = arith.constant 0 : i32
    return %c0_i32, %c0_i32_0 : i32, i32
  }
  func.func @transform_3(%arg0: i32, %arg1: i32) -> (i32, i32, i32) {
    %c0_i32 = arith.constant 0 : i32
    %c0_i32_0 = arith.constant 0 : i32
    %c0_i32_1 = arith.constant 0 : i32
    %c0_i32_2 = arith.constant 0 : i32
    return %c0_i32, %c0_i32_0, %c0_i32_1 : i32, i32, i32
  }
  func.func @transform_4(%arg0: i32, %arg1: i32) -> (i32, i32) {
    %c0_i32 = arith.constant 0 : i32
    %c0_i32_0 = arith.constant 0 : i32
    %c0_i32_1 = arith.constant 0 : i32
    return %c0_i32, %c0_i32_0 : i32, i32
  }
  func.func @transform_5(%arg0: i32, %arg1: i32) -> (i32, i32, i32) {
    %c0_i32 = arith.constant 0 : i32
    %c0_i32_0 = arith.constant 0 : i32
    return %arg0, %c0_i32, %arg1 : i32, i32, i32
  }
}

</mosaic_0001>

<bundles_post_ra>
// kernel: double_conv_pallas.1
= control target key start
LH: loop header
LB: loop body
LE: loop exit
PB: predicated region body
PF: predicated region fallthrough
CT: control target
= control target key end

     0   :  { %s3025_s18 = smov 0   ;;  %s3027_s19 = smov 0   ;;  %s3375_s0 = inlined_call_operand.vmem [shape: f32[2,4,384], index: 0, kind: input, shape index: {}]   ;;  %s3376_s1 = inlined_call_operand.vmem [shape: f32[9,8,4], index: 1, kind: input, shape index: {}]   ;;  %s3377_s2 = inlined_call_operand.vmem [shape: f32[8,1], index: 2, kind: input, shape index: {}]   ;;  %s3378_s3 = inlined_call_operand.vmem [shape: f32[9,8,8], index: 3, kind: input, shape index: {}]   ;;  %s3379_s4 = inlined_call_operand.vmem [shape: f32[8,1], index: 4, kind: input, shape index: {}]   ;;  %s3380_s5 = inlined_call_operand.vmem [shape: f32[2,8,256], index: 5, kind: output, shape index: {}]  }
   0x1   :  { %s3029_s20 = smov 0  }
   0x2 LB: > { %s27_s21 = sadd.s32 1, %s2972_s19  ;;  %p2734_p0 = scmp.ge.s32.totalorder %s2976_s20, 1  ;;  %s2976_s20 = sphi %s3029_s20, %s15_s20   ;;  %s2972_s19 = sphi %s3027_s19, %s3390_s19   ;;  %s2968_s18 = sphi %s3025_s18, %s3389_s18  }
   0x3   : > { %p29_p1 = scmp.ge.s32.totalorder %s27_s21, 2  ;;  %p167_p2 = scmp.lt.s32.totalorder %s2976_s20, 3 }
   0x5   : > { %s3392_s21 = smov (%p29_p1, %s27_s21), 0  ;;  %p168_p3 = pnand %p2734_p0, %p167_p2 }
   0x6   : > { %p193_p4 = scmp.lt.s32.totalorder (!%p168_p3), %s2968_s18, 1 }
   0x7   : > { %171 = sbr.rel (%p168_p3) target bundleno = 818 (0x332), region = 36 }
   0xe   : > { %s194_s22 = scalar_select %p193_p4, %s2968_s18, 1 }
  0x10   : > { %s2811_s23 = sshll.u32 %s194_s22, 4 }
  0x11   : > { %s3046_s26 = scalar_lea.vmem %s3380_s5, %s2811_s23 }
  0x12   : > { %s2812_s27 = smul.u32 12, %s2968_s18 }
  0x14   : > { %s208_s30 = scalar_lea.vmem %s3375_s0, %s2812_s27 }
  0x15   : > { %v246_v0 = vld [vmem:[%s208_s30] sm:$0xff]  ;;  %v2738_v1 = vld [vmem:[%s208_s30 + $0x8] sm:$0xf] }
  0x16   : > { %247 = vst [vmem:[#allocation2] sm:$0xff] %v246_v0  ;;  %258 = vst [vmem:[#allocation2 + $0x8] sm:$0xf] %v2738_v1 }
  0x17   : > { %262 = vsyncadd [#allocation4], 192 }
  0x18   : > { %2964 = dma.done.wait [#allocation4], 192 }
  0x19   : > { %2965 = vsyncadd [#allocation4], 4294967104  ;;  %s2978_s6 = smov 1   ;;  %v2979_v5 = vmov 0.0   ;;  %s2980_s7 = smov 17   ;;  %v1828_v6 = vld [vmem:[%s3377_s2] sm:$0xff]  ;;  %v267_v8 = vlaneseq }
  0x1a   : > { %420 = vmatprep.mubr.f32.mxu1 %v2979_v5  ;;  %573 = vmatprep.mubr.f32.mxu0 %v2979_v5  ;;  %s2981_s8 = smov 113   ;;  %s2982_s9 = smov 16   ;;  %v2987_v7 = vmov 0   ;;  %vm346_vm1 = vcmask 1043456   ;;  %v2739_v15 = vld [vmem:[%s3376_s1 + $0x18] sm:$0xff]  ;;  %vm342_vm2 = vcmask 31744  }
  0x1b   : > { %s2983_s10 = smov 112   ;;  %s2984_s11 = smov 127   ;;  %2949 = vset.pattern.permute.xlu0 %v2987_v7  ;;  %2950 = vset.pattern.permute.xlu1 %v2987_v7  ;;  %v3097_v9 = vand.u32 127, %v267_v8  ;;  %vm2988_vm4 = vmmov 0   ;;  %v329_v22 = vld [vmem:[%s3376_s1] sm:$0xff]  ;;  %v2750_v30 = vld [vmem:[%s3376_s1 + $0x30] sm:$0xff] }
  0x1c   : > { %s2985_s12 = smov 15   ;;  %s2986_s13 = smov 111   ;;  %v2757_v35 = vld [vmem:[%s3376_s1 + $0x20] sm:$0xff]  ;;  %v2756_v42 = vld [vmem:[%s3376_s1 + $0x8] sm:$0xff]  ;;  %v2768_v51 = vld [vmem:[%s3376_s1 + $0x38] sm:$0xff] }
  0x1d   : > { %v3051_v2 = vld [vmem:[#allocation2 + $0x8] sm:$0xf]  ;;  %v3053_v3 = vld [vmem:[#allocation2] sm:$0xff]  ;;  %vm336_vm0 = vcmp.lt.s32.totalorder %v3097_v9, 1  ;;  %vm325_vm3 = vcmp.lt.s32.totalorder %v3097_v9, 17  ;;  %vm656_vm5 = vcmp.lt.s32.totalorder %v3097_v9, 113 }
  0x1e   : > { %334 = vrot.lane.b32.xlu1 %v3051_v2, %s2978_s6  ;;  %330 = vrot.lane.b32.xlu0 %v3053_v3, %s2978_s6  ;;  %v3059_v4 = vcombine.high %v3053_v3, %v3053_v3  ;;  %vm836_vm6 = vcmp.lt.s32.totalorder %v3097_v9, 16  ;;  %vm1153_vm7 = vcmp.lt.s32.totalorder %v3097_v9, 112  ;;  %vm1336_vm8 = vcmp.lt.s32.totalorder %v3097_v9, 127  ;;  %v2775_v56 = vld [vmem:[%s3376_s1 + $0x28] sm:$0xff]  ;;  %v2774_v63 = vld [vmem:[%s3376_s1 + $0x10] sm:$0xff]  ;;  %s2989_s16 = smov 97  }
  0x1f   : > { %vm1324_vm9 = vcmp.lt.s32.totalorder %v3097_v9, 15  ;;  %vm1654_vm10 = vcmp.lt.s32.totalorder %v3097_v9, 111  ;;  %s2990_s17 = smov 81   ;;  %s2991_s18 = smov 96  }
  0x20   : > { %s2992_s22 = smov 95   ;;  %s2993_s23 = smov 80  }
  0x21   : > { %s2994_s24 = smov 79  }
  0x22   : > { %319 = vrot.lane.b32.xlu1 %v3053_v3, %s2980_s7  ;;  %332 = vrot.lane.b32.xlu0 %v3059_v4, %s2978_s6 }
  0x26   : > { %323 = vrot.lane.b32.xlu1 %v3051_v2, %s2980_s7  ;;  %321 = vrot.lane.b32.xlu0 %v3059_v4, %s2980_s7 }
  0x2a   : > { %652 = vrot.lane.b32.xlu0 %v3059_v4, %s2981_s8  ;;  %654 = vrot.lane.b32.xlu1 %v3051_v2, %s2981_s8 }
  0x2e   : > { %650 = vrot.lane.b32.xlu0 %v3053_v3, %s2981_s8  ;;  %830 = vrot.lane.b32.xlu1 %v3053_v3, %s2982_s9 }
  0x32   : > { %832 = vrot.lane.b32.xlu0 %v3059_v4, %s2982_s9  ;;  %834 = vrot.lane.b32.xlu1 %v3051_v2, %s2982_s9 }
  0x36   : > { %1149 = vrot.lane.b32.xlu0 %v3059_v4, %s2983_s10  ;;  %1151 = vrot.lane.b32.xlu1 %v3051_v2, %s2983_s10 }
  0x3a   : > { %1147 = vrot.lane.b32.xlu0 %v3053_v3, %s2983_s10  ;;  %1332 = vrot.lane.b32.xlu1 %v3059_v4, %s2984_s11 }
  0x3e   : > { %1330 = vrot.lane.b32.xlu1 %v3053_v3, %s2984_s11  ;;  %1334 = vrot.lane.b32.xlu0 %v3051_v2, %s2984_s11 }
  0x42   : > { %1318 = vrot.lane.b32.xlu0 %v3053_v3, %s2985_s12  ;;  %1320 = vrot.lane.b32.xlu1 %v3059_v4, %s2985_s12 }
  0x46   : > { %1322 = vrot.lane.b32.xlu0 %v3051_v2, %s2985_s12  ;;  %1650 = vrot.lane.b32.xlu1 %v3059_v4, %s2986_s13 }
  0x4a   : > { %1652 = vrot.lane.b32.xlu0 %v3051_v2, %s2986_s13  ;;  %1648 = vrot.lane.b32.xlu1 %v3053_v3, %s2986_s13 }
  0x4e   : > { %1831 = vperm.xlu0 %2949, %v1828_v6  }
  0x90   : > { %v335_v10 = vpop.permute.xlu1 %334  ;;  %v331_v11 = vpop.permute.xlu0 %330 }
  0x91   : > { %v339_v16 = vsel %vm336_vm0, %v335_v10, %v331_v11 }
  0x94   : > { %v320_v12 = vpop.permute.xlu1 %319  ;;  %v333_v13 = vpop.permute.xlu0 %332 }
  0x95   : > { %v338_v14 = vsel %vm336_vm0, %v331_v11, %v333_v13  ;;  %v337_v17 = vsel %vm336_vm0, %v333_v13, %v335_v10  ;;  %v269_v13 = vadd.s32 128, %v3097_v9 }
  0x96   : > { %2740 = vmatprep.subr.msk.mxu1 %vm346_vm1, %v338_v14  ;;  %v270_v14 = vadd.s32 256, %v3097_v9 }
  0x97   : > { %2741 = vmatpush1.msk.msra.mxu1 %vm346_vm1, %v339_v16 }
  0x98   : > { %v324_v18 = vpop.permute.xlu1 %323  ;;  %v322_v19 = vpop.permute.xlu0 %321  ;;  %2742 = vmatmul.mubr.msk.f32.vlgmr.msra.gmra.mrb[0].mxu1 %vm342_vm2, %v2739_v15  ;;  %2831 = vmatprep.subr.mxu1 %v2979_v5 }
  0x99   : > { %2832 = vmatpush3.msk.msra.mxu1 %vm346_vm1, %v337_v17  ;;  %v327_v20 = vsel %vm325_vm3, %v320_v12, %v322_v19  ;;  %2833 = vmatprep.mubr.msk.f32.mxu1 %vm2988_vm4, %v2979_v5  ;;  %v328_v21 = vsel %vm325_vm3, %v324_v18, %v320_v12  ;;  %v326_v23 = vsel %vm325_vm3, %v322_v19, %v324_v18  ;;  %v275_v17 = vand.u32 15, %v3097_v9 }
  0x9a   : > { %2745 = vmatprep.subr.msk.mxu0 %vm346_vm1, %v327_v20  ;;  %2836 = vmatprep.subr.mxu1 %v2979_v5  ;;  %v282_v18 = vand.u32 15, %v269_v13  ;;  %v289_v19 = vand.u32 15, %v270_v14  ;;  %vm1869_vm3 = vcmp.lt.s32.totalorder %v3097_v9, 97 }
  0x9b   : > { %2746 = vmatpush1.msk.msra.mxu0 %vm346_vm1, %v328_v21  ;;  %vm3257_vm11 = vcmp.gt.s32.totalorder %v275_v17, 0  ;;  %vm3269_vm14 = vcmp.lt.s32.totalorder %v275_v17, 15 }
  0x9c   : > { %v653_v24 = vpop.permute.xlu0 %652  ;;  %2834 = vmatmul.mubr.msk.f32.vlgmr.msra.gmra.mrb[2].mxu1 %vm342_vm2, %v2739_v15  ;;  %2747 = vmatmul.mubr.msk.f32.vlgmr.msra.gmra.mrb[0].mxu0 %vm342_vm2, %v329_v22  ;;  %v655_v25 = vpop.permute.xlu1 %654  ;;  %vm3261_vm12 = vcmp.gt.s32.totalorder %v282_v18, 0  ;;  %vm309_vm13 = vcmp.gt.s32.totalorder %v289_v19, 0  ;;  %vm312_vm15 = vcmp.lt.s32.totalorder %v289_v19, 15  ;;  %vm3273_vm0 = vcmp.lt.s32.totalorder %v282_v18, 15  ;;  %v2795_v19 = vld [vmem:[%s3378_s3 + $0x30] sm:$0xff] }
  0x9d   : > { %2837 = vmatpush3.msk.msra.mxu1 %vm346_vm1, %v326_v23  ;;  %v657_v26 = vsel %vm656_vm5, %v653_v24, %v655_v25  ;;  %2838 = vmatprep.mubr.msk.f32.mxu1 %vm2988_vm4, %v2979_v5 }
  0x9e   : > { %2751 = vmatprep.subr.msk.mxu0 %vm346_vm1, %v657_v26  ;;  %738 = vmatprep.mubr.f32.mxu0 %v2979_v5 }
  0x9f   : > { %2841 = vmatprep.subr.mxu1 %v2979_v5 }
  0xa0   : > { %v651_v27 = vpop.permute.xlu0 %650  ;;  %v831_v28 = vpop.permute.xlu1 %830 }
  0xa1   : > { %v658_v29 = vsel %vm656_vm5, %v651_v27, %v653_v24  ;;  %v659_v31 = vsel %vm656_vm5, %v655_v25, %v651_v27 }
  0xa2   : > { %2752 = vmatpush1.msk.msra.mxu0 %vm346_vm1, %v658_v29 }
  0xa3   : > { %2758 = vmatprep.subr.msk.mxu0 %vm346_vm1, %v3059_v4 }
  0xa4   : > { %2839 = vmatmul.mubr.msk.f32.vlgmr.msra.gmra.mrb[2].mxu1 %vm342_vm2, %v329_v22  ;;  %2753 = vmatmul.mubr.msk.f32.vlgmr.msra.gmra.mrb[0].mxu0 %vm342_vm2, %v2750_v30  ;;  %v833_v32 = vpop.permute.xlu0 %832  ;;  %v835_v33 = vpop.permute.xlu1 %834 }
  0xa5   : > { %2842 = vmatpush3.msk.msra.mxu1 %vm346_vm1, %v659_v31  ;;  %2759 = vmatpush1.msk.msra.mxu0 %vm346_vm1, %v3053_v3  ;;  %v838_v34 = vsel %vm836_vm6, %v831_v28, %v833_v32  ;;  %v839_v36 = vsel %vm836_vm6, %v835_v33, %v831_v28  ;;  %v837_v44 = vsel %vm836_vm6, %v833_v32, %v835_v33  ;;  %vm2029_vm6 = vcmp.lt.s32.totalorder %v3097_v9, 81 }
  0xa6   : > { %917 = vmatprep.mubr.f32.mxu0 %v2979_v5  ;;  %2763 = vmatprep.subr.msk.mxu0 %vm346_vm1, %v838_v34 }
  0xa7   : > { %2843 = vmatprep.mubr.msk.f32.mxu1 %vm2988_vm4, %v2979_v5  ;;  %2846 = vmatprep.subr.mxu1 %v2979_v5 }
  0xa8   : > { %2760 = vmatmul.mubr.msk.f32.vlgmr.msra.gmra.mrb[2].mxu0 %vm342_vm2, %v2757_v35  ;;  %v1150_v37 = vpop.permute.xlu0 %1149  ;;  %v1152_v38 = vpop.permute.xlu1 %1151 }
  0xa9   : > { %2764 = vmatpush1.msk.msra.mxu0 %vm346_vm1, %v839_v36  ;;  %v1154_v39 = vsel %vm1153_vm7, %v1150_v37, %v1152_v38  ;;  %1070 = vmatprep.mubr.f32.mxu0 %v2979_v5 }
  0xaa   : > { %2769 = vmatprep.subr.msk.mxu0 %vm346_vm1, %v1154_v39 }
  0xac   : > { %2844 = vmatmul.mubr.msk.f32.vlgmr.msra.gmra.mrb[2].mxu1 %vm342_vm2, %v2750_v30  ;;  %v1148_v40 = vpop.permute.xlu0 %1147  ;;  %v1333_v41 = vpop.permute.xlu1 %1332 }
  0xad   : > { %2847 = vmatpush3.msk.msra.mxu1 %vm346_vm1, %v3051_v2  ;;  %2848 = vmatprep.mubr.msk.f32.mxu1 %vm2988_vm4, %v2979_v5  ;;  %v1155_v43 = vsel %vm1153_vm7, %v1148_v40, %v1150_v37  ;;  %v1156_v48 = vsel %vm1153_vm7, %v1152_v38, %v1148_v40  ;;  %v2786_v2 = vld [vmem:[%s3376_s1 + $0x40] sm:$0xff] }
  0xae   : > { %2851 = vmatprep.subr.mxu1 %v2979_v5 }
  0xb0   : > { %2849 = vmatmul.mubr.msk.f32.vlgmr.msra.gmra.mrb[4].mxu1 %vm342_vm2, %v2757_v35  ;;  %2765 = vmatmul.mubr.msk.f32.vlgmr.msra.gmra.mrb[2].mxu0 %vm342_vm2, %v2756_v42  ;;  %v1331_v45 = vpop.permute.xlu1 %1330  ;;  %v1335_v46 = vpop.permute.xlu0 %1334 }
  0xb1   : > { %2852 = vmatpush3.msk.msra.mxu1 %vm346_vm1, %v837_v44  ;;  %2770 = vmatpush1.msk.msra.mxu0 %vm346_vm1, %v1155_v43  ;;  %v1337_v47 = vsel %vm1336_vm8, %v1333_v41, %v1335_v46  ;;  %v1338_v52 = vsel %vm1336_vm8, %v1331_v45, %v1333_v41  ;;  %v1339_v53 = vsel %vm1336_vm8, %v1335_v46, %v1331_v45  ;;  %vm2130_vm8 = vcmp.lt.s32.totalorder %v3097_v9, 96 }
  0xb2   : > { %2853 = vmatprep.mubr.msk.f32.mxu1 %vm2988_vm4, %v2979_v5  ;;  %2856 = vmatprep.subr.mxu1 %v2979_v5 }
  0xb3   : > { %1235 = vmatprep.mubr.f32.mxu0 %v2979_v5  ;;  %2776 = vmatprep.subr.msk.mxu0 %vm346_vm1, %v1337_v47 }
  0xb4   : > { %2854 = vmatmul.mubr.msk.f32.vlgmr.msra.gmra.mrb[6].mxu1 %vm342_vm2, %v2756_v42  ;;  %v1319_v49 = vpop.permute.xlu0 %1318  ;;  %v1321_v50 = vpop.permute.xlu1 %1320 }
  0xb5   : > { %2857 = vmatpush3.msk.msra.mxu1 %vm346_vm1, %v1156_v48  ;;  %2858 = vmatprep.mubr.msk.f32.mxu1 %vm2988_vm4, %v2979_v5  ;;  %v1326_v54 = vsel %vm1324_vm9, %v1319_v49, %v1321_v50 }
  0xb6   : > { %2861 = vmatprep.subr.mxu1 %v2979_v5 }
  0xb8   : > { %2771 = vmatmul.mubr.msk.f32.vlgmr.msra.gmra.mrb[2].mxu0 %vm342_vm2, %v2768_v51  ;;  %2859 = vmatmul.mubr.msk.f32.vlgmr.msra.gmra.mrb[8].mxu1 %vm342_vm2, %v2768_v51  ;;  %v1323_v55 = vpop.permute.xlu0 %1322  ;;  %v1651_v57 = vpop.permute.xlu1 %1650 }
  0xb9   : > { %2777 = vmatpush1.msk.msra.mxu0 %vm346_vm1, %v1338_v52  ;;  %2862 = vmatpush3.msk.msra.mxu1 %vm346_vm1, %v1339_v53  ;;  %v1325_v58 = vsel %vm1324_vm9, %v1321_v50, %v1323_v55  ;;  %v1327_v59 = vsel %vm1324_vm9, %v1323_v55, %v1319_v49  ;;  %vm2547_vm9 = vcmp.lt.s32.totalorder %v3097_v9, 79 }
  0xba   : > { %1418 = vmatprep.mubr.f32.mxu0 %v2979_v5  ;;  %2863 = vmatprep.mubr.msk.f32.mxu1 %vm2988_vm4, %v2979_v5 }
  0xbb   : > { %2781 = vmatprep.subr.msk.mxu0 %vm346_vm1, %v1326_v54  ;;  %2866 = vmatprep.subr.mxu1 %v2979_v5 }
  0xbc   : > { %2778 = vmatmul.mubr.msk.f32.vlgmr.msra.gmra.mrb[4].mxu0 %vm342_vm2, %v2775_v56  ;;  %2864 = vmatmul.mubr.msk.f32.vlgmr.msra.gmra.mrb[10].mxu1 %vm342_vm2, %v2775_v56  ;;  %v1653_v60 = vpop.permute.xlu0 %1652  ;;  %v1649_v62 = vpop.permute.xlu1 %1648 }
  0xbd   : > { %2782 = vmatpush1.msk.msra.mxu0 %vm346_vm1, %v1327_v59  ;;  %2867 = vmatpush3.msk.msra.mxu1 %vm346_vm1, %v1325_v58  ;;  %v1655_v61 = vsel %vm1654_vm10, %v1651_v57, %v1653_v60  ;;  %v1656_v0 = vsel %vm1654_vm10, %v1649_v62, %v1651_v57  ;;  %v1657_v1 = vsel %vm1654_vm10, %v1653_v60, %v1649_v62  ;;  %v2632_v57 = vld [vmem:[%s3379_s4] sm:$0xff] }
  0xbe   : > { %1571 = vmatprep.mubr.f32.mxu0 %v2979_v5  ;;  %2868 = vmatprep.mubr.msk.f32.mxu1 %vm2988_vm4, %v2979_v5 }
  0xbf   : > { %2787 = vmatprep.subr.msk.mxu0 %vm346_vm1, %v1655_v61  ;;  %2871 = vmatprep.subr.mxu1 %v2979_v5 }
  0xc4   : > { %2783 = vmatmul.mubr.msk.f32.vlgmr.msra.gmra.mrb[4].mxu0 %vm342_vm2, %v2774_v63  ;;  %2869 = vmatmul.mubr.msk.f32.vlgmr.msra.gmra.mrb[10].mxu1 %vm342_vm2, %v2774_v63 }
  0xc5   : > { %2788 = vmatpush1.msk.msra.mxu0 %vm346_vm1, %v1656_v0  ;;  %2872 = vmatpush3.msk.msra.mxu1 %vm346_vm1, %v1657_v1  ;;  %vm1847_vm1 = vcmask 261120  }
  0xc6   : > { %1736 = vmatprep.mubr.f32.mxu0 %v2979_v5  ;;  %2873 = vmatprep.mubr.msk.f32.mxu1 %vm2988_vm4, %v2979_v5  ;;  %vm1874_vm4 = vcmask 64512  }
  0xcc   : > { %2789 = vmatmul.mubr.msk.f32.vlgmr.msra.gmra.mrb[4].mxu0 %vm342_vm2, %v2786_v2  ;;  %2874 = vmatmul.mubr.msk.f32.vlgmr.msra.gmra.mrb[10].mxu1 %vm342_vm2, %v2786_v2  ;;  %vm1849_vm2 = vcmask 523520  }
  0xcd   : > { %1942 = vmatprep.mubr.f32.mxu0 %v2979_v5  ;;  %2202 = vmatprep.mubr.f32.mxu1 %v2979_v5  ;;  %v1832_v38 = vpop.permute.xlu0 %1831 }
 0x16b   : > { %v422_v3 = vpop.f32.mrb[0].mxu1 }
 0x16c   : > { %v424_v4 = vpop.f32.mrb[1].mxu1 }
 0x177   : > { %v740_v6 = vpop.f32.mrb[0].mxu0 }
 0x178   : > { %v2876_v7 = vadd.f32 %v740_v6, %v422_v3  ;;  %v742_v8 = vpop.f32.mrb[1].mxu0  ;;  %v2792_v3 = vld [vmem:[%s3378_s3 + $0x18] sm:$0xff] }
 0x179   : > { %v2877_v10 = vadd.f32 %v742_v8, %v424_v4 }
 0x17a   : > { %v824_v25 = vsel %vm3257_vm11, %v2876_v7, 0.0 }
 0x17b   : > { %v825_v30 = vsel %vm3261_vm12, %v2877_v10, 0.0 }
 0x17f   : > { %v811_v11 = vpop.f32.mrb[2].mxu1 }
 0x180   : > { %v2845_v12 = vpop.f32.mrb[3].mxu1  ;;  %v826_v33 = vsel %vm309_vm13, %v811_v11, 0.0 }
 0x181   : > { %v1862_v12 = vld [vmem:[%s3378_s3] sm:$0xff] }
 0x183   : > { %v990_v15 = vpop.f32.mrb[4].mxu1 }
 0x184   : > { %v2850_v16 = vpop.f32.mrb[5].mxu1 }
 0x187   : > { %v1143_v20 = vpop.f32.mrb[6].mxu1 }
 0x188   : > { %v1144_v21 = vadd.f32 %v1143_v20, %v990_v15  ;;  %v2855_v22 = vpop.f32.mrb[7].mxu1 }
 0x18b   : > { %v1237_v26 = vpop.f32.mrb[2].mxu0  ;;  %v1308_v27 = vpop.f32.mrb[8].mxu1 }
 0x18c   : > { %v1315_v28 = vadd.f32 %v1237_v26, %v824_v25  ;;  %v1314_v29 = vadd.f32 %v1308_v27, %v1144_v21  ;;  %v1239_v31 = vpop.f32.mrb[3].mxu0  ;;  %v2860_v32 = vpop.f32.mrb[9].mxu1  ;;  %v2798_v26 = vld [vmem:[%s3378_s3 + $0x20] sm:$0xff] }
 0x18d   : > { %v1316_v34 = vadd.f32 %v1239_v31, %v825_v30 }
 0x18e   : > { %v1317_v35 = vadd.f32 %v1314_v29, %v826_v33 }
 0x19f   : > { %v1738_v39 = vpop.f32.mrb[4].mxu0  ;;  %v1809_v40 = vpop.f32.mrb[10].mxu1 }
 0x1a0   : > { %v1822_v41 = vsel %vm3269_vm14, %v1738_v39, 0.0  ;;  %v1824_v42 = vsel %vm312_vm15, %v1809_v40, 0.0  ;;  %v1740_v43 = vpop.f32.mrb[5].mxu0  ;;  %v2875_v44 = vpop.f32.mrb[11].mxu1  ;;  %v2803_v40 = vld [vmem:[%s3378_s3 + $0x10] sm:$0xff] }
 0x1a1   : > { %v1825_v45 = vadd.f32 %v1822_v41, %v1315_v28  ;;  %v1827_v46 = vadd.f32 %v1824_v42, %v1317_v35  ;;  %v1823_v47 = vsel %vm3273_vm0, %v1740_v43, 0.0  ;;  %v2804_v28 = vld [vmem:[%s3378_s3 + $0x28] sm:$0xff] }
 0x1a2   : > { %v1826_v48 = vadd.f32 %v1823_v47, %v1316_v34 }
 0x1a3   : > { %v1834_v49 = vadd.f32 %v1832_v38, %v1825_v45  ;;  %v1836_v50 = vadd.f32 %v1832_v38, %v1827_v46 }
 0x1a4   : > { %v1835_v51 = vadd.f32 %v1832_v38, %v1826_v48  ;;  %v2797_v38 = vld [vmem:[%s3378_s3 + $0x8] sm:$0xff]  ;;  %v2801_v48 = vld [vmem:[%s3378_s3 + $0x38] sm:$0xff] }
 0x1a5   : > { %v1837_v52 = vmax.f32 %v1834_v49, 0.0  ;;  %v1839_v53 = vmax.f32 %v1836_v50, 0.0 }
 0x1a6   : > { %v1838_v54 = vmax.f32 %v1835_v51, 0.0 }
 0x1a7   : > { %1840 = vst [vmem:[#allocation3] sm:$0xff] %v1837_v52  ;;  %1842 = vst [vmem:[#allocation3 + $0x10] sm:$0xff] %v1839_v53 }
 0x1a8   : > { %1848 = vst.msk [vmem:[#allocation3] sm:$0xff] %vm1847_vm1, %v2979_v5  ;;  %1865 = vrot.lane.b32.xlu1 %v1838_v54, %s2989_s16 }
 0x1a9   : > { %1850 = vst.msk [vmem:[#allocation3 + $0x10] sm:$0xff] %vm1849_vm2, %v2979_v5 }
 0x1ac   : > { %1856 = vrot.lane.b32.xlu1 %v1838_v54, %s2981_s8 }
 0x1af   : > { %v1851_v55 = vld [vmem:[#allocation3] sm:$0xff] }
 0x1b0   : > { %1863 = vrot.lane.b32.xlu0 %v1851_v55, %s2989_s16  ;;  %1854 = vrot.lane.b32.xlu1 %v1851_v55, %s2981_s8  ;;  %v1853_v56 = vld [vmem:[#allocation3 + $0x10] sm:$0xff] }
 0x1b4   : > { %2025 = vrot.lane.b32.xlu0 %v1838_v54, %s2990_s17  ;;  %2126 = vrot.lane.b32.xlu1 %v1838_v54, %s2991_s18 }
 0x1b8   : > { %2023 = vrot.lane.b32.xlu0 %v1851_v55, %s2990_s17  ;;  %1867 = vrot.lane.b32.xlu1 %v1853_v56, %s2989_s16 }
 0x1bc   : > { %2384 = vrot.lane.b32.xlu0 %v1838_v54, %s2992_s22  ;;  %2124 = vrot.lane.b32.xlu1 %v1851_v55, %s2991_s18 }
 0x1c0   : > { %1858 = vrot.lane.b32.xlu0 %v1853_v56, %s2981_s8  ;;  %2116 = vrot.lane.b32.xlu1 %v1838_v54, %s2983_s10 }
 0x1c4   : > { %2382 = vrot.lane.b32.xlu0 %v1851_v55, %s2992_s22  ;;  %2114 = vrot.lane.b32.xlu1 %v1851_v55, %s2983_s10 }
 0x1c8   : > { %2374 = vrot.lane.b32.xlu0 %v1838_v54, %s2986_s13  ;;  %2027 = vrot.lane.b32.xlu1 %v1853_v56, %s2990_s17 }
 0x1cc   : > { %2128 = vrot.lane.b32.xlu0 %v1853_v56, %s2991_s18  ;;  %2386 = vrot.lane.b32.xlu1 %v1853_v56, %s2992_s22 }
 0x1d0   : > { %2372 = vrot.lane.b32.xlu0 %v1851_v55, %s2986_s13  ;;  %2285 = vrot.lane.b32.xlu1 %v1838_v54, %s2993_s23 }
 0x1d4   : > { %2118 = vrot.lane.b32.xlu0 %v1853_v56, %s2983_s10  ;;  %2376 = vrot.lane.b32.xlu1 %v1853_v56, %s2986_s13 }
 0x1d8   : > { %2543 = vrot.lane.b32.xlu0 %v1838_v54, %s2994_s24  ;;  %2283 = vrot.lane.b32.xlu1 %v1851_v55, %s2993_s23 }
 0x1dc   : > { %2287 = vrot.lane.b32.xlu0 %v1853_v56, %s2993_s23  ;;  %2545 = vrot.lane.b32.xlu1 %v1853_v56, %s2994_s24 }
 0x1e0   : > { %2541 = vrot.lane.b32.xlu0 %v1851_v55, %s2994_s24  ;;  %2635 = vperm.xlu1 %2950, %v2632_v57  }
 0x21a   : > { %v1866_v58 = vpop.permute.xlu1 %1865 }
 0x21e   : > { %v1857_v59 = vpop.permute.xlu1 %1856 }
 0x222   : > { %v1864_v60 = vpop.permute.xlu0 %1863  ;;  %v1855_v61 = vpop.permute.xlu1 %1854 }
 0x223   : > { %v1871_v4 = vsel %vm1869_vm3, %v1864_v60, %v1866_v58  ;;  %v1861_v13 = vsel %vm656_vm5, %v1855_v61, %v1857_v59 }
 0x226   : > { %v2026_v62 = vpop.permute.xlu0 %2025  ;;  %v2127_v63 = vpop.permute.xlu1 %2126 }
 0x22a   : > { %v2024_v0 = vpop.permute.xlu0 %2023  ;;  %v1868_v1 = vpop.permute.xlu1 %1867 }
 0x22b   : > { %v1870_v2 = vsel %vm1869_vm3, %v1866_v58, %v1868_v1  ;;  %v2031_v20 = vsel %vm2029_vm6, %v2024_v0, %v2026_v62 }
 0x22c   : > { %1878 = vmatprep.subr.mxu0 %v1870_v2 }
 0x22d   : > { %1879 = vmatpush1.msra.mxu0 %v1871_v4 }
 0x22e   : > { %v2385_v6 = vpop.permute.xlu0 %2384  ;;  %2793 = vmatmul.mubr.msk.f32.vlgmr.msra.gmra.mrb[6].mxu0 %vm1874_vm4, %v2792_v3  ;;  %v2125_v7 = vpop.permute.xlu1 %2124 }
 0x22f   : > { %2016 = vmatprep.mubr.f32.mxu0 %v2979_v5  ;;  %v2132_v30 = vsel %vm2130_vm8, %v2125_v7, %v2127_v63 }
 0x232   : > { %v1859_v8 = vpop.permute.xlu0 %1858  ;;  %v2117_v10 = vpop.permute.xlu1 %2116 }
 0x233   : > { %v1860_v11 = vsel %vm656_vm5, %v1857_v59, %v1859_v8  ;;  %vm2388_vm5 = vcmp.lt.s32.totalorder %v3097_v9, 95 }
 0x234   : > { %1952 = vmatprep.subr.mxu0 %v1860_v11 }
 0x235   : > { %1953 = vmatpush1.msra.mxu0 %v1861_v13 }
 0x236   : > { %v2383_v14 = vpop.permute.xlu0 %2382  ;;  %2794 = vmatmul.mubr.msk.f32.vlgmr.msra.gmra.mrb[6].mxu0 %vm1874_vm4, %v1862_v12  ;;  %v2115_v15 = vpop.permute.xlu1 %2114 }
 0x237   : > { %2101 = vmatprep.mubr.f32.mxu0 %v2979_v5  ;;  %v2390_v29 = vsel %vm2388_vm5, %v2383_v14, %v2385_v6  ;;  %v2121_v41 = vsel %vm1153_vm7, %v2115_v15, %v2117_v10 }
 0x23a   : > { %v2375_v16 = vpop.permute.xlu0 %2374  ;;  %v2028_v17 = vpop.permute.xlu1 %2027 }
 0x23b   : > { %v2030_v18 = vsel %vm2029_vm6, %v2026_v62, %v2028_v17 }
 0x23c   : > { %2037 = vmatprep.subr.mxu0 %v2030_v18 }
 0x23d   : > { %2038 = vmatpush1.msra.mxu0 %v2031_v20 }
 0x23e   : > { %v2129_v21 = vpop.permute.xlu0 %2128  ;;  %2796 = vmatmul.mubr.msk.f32.vlgmr.msra.gmra.mrb[6].mxu0 %vm1874_vm4, %v2795_v19  ;;  %v2387_v22 = vpop.permute.xlu1 %2386 }
 0x23f   : > { %v2131_v25 = vsel %vm2130_vm8, %v2127_v63, %v2129_v21  ;;  %v2389_v27 = vsel %vm2388_vm5, %v2385_v6, %v2387_v22  ;;  %2460 = vmatprep.mubr.f32.mxu0 %v2979_v5 }
 0x240   : > { %2138 = vmatprep.subr.mxu1 %v2131_v25  ;;  %2396 = vmatprep.subr.mxu0 %v2389_v27 }
 0x241   : > { %2139 = vmatpush1.msra.mxu1 %v2132_v30  ;;  %2397 = vmatpush1.msra.mxu0 %v2390_v29 }
 0x242   : > { %v2373_v31 = vpop.permute.xlu0 %2372  ;;  %2799 = vmatmul.mubr.msk.f32.vlgmr.msra.gmra.mrb[12].mxu1 %vm1874_vm4, %v2798_v26  ;;  %2805 = vmatmul.mubr.msk.f32.vlgmr.msra.gmra.mrb[8].mxu0 %vm1874_vm4, %v2804_v28  ;;  %v2286_v32 = vpop.permute.xlu1 %2285 }
 0x243   : > { %2276 = vmatprep.mubr.f32.mxu1 %v2979_v5  ;;  %2534 = vmatprep.mubr.f32.mxu0 %v2979_v5  ;;  %v2379_v42 = vsel %vm1654_vm10, %v2373_v31, %v2375_v16 }
 0x246   : > { %v2119_v33 = vpop.permute.xlu0 %2118  ;;  %v2377_v34 = vpop.permute.xlu1 %2376 }
 0x247   : > { %v2120_v35 = vsel %vm1153_vm7, %v2117_v10, %v2119_v33  ;;  %v2378_v39 = vsel %vm1654_vm10, %v2375_v16, %v2377_v34  ;;  %vm2289_vm7 = vcmp.lt.s32.totalorder %v3097_v9, 80 }
 0x248   : > { %2212 = vmatprep.subr.mxu1 %v2120_v35  ;;  %2470 = vmatprep.subr.mxu0 %v2378_v39 }
 0x249   : > { %2213 = vmatpush1.msra.mxu1 %v2121_v41  ;;  %2471 = vmatpush1.msra.mxu0 %v2379_v42 }
 0x24a   : > { %v2544_v43 = vpop.permute.xlu0 %2543  ;;  %2800 = vmatmul.mubr.msk.f32.vlgmr.msra.gmra.mrb[12].mxu1 %vm1874_vm4, %v2797_v38  ;;  %2806 = vmatmul.mubr.msk.f32.vlgmr.msra.gmra.mrb[8].mxu0 %vm1874_vm4, %v2803_v40  ;;  %v2284_v44 = vpop.permute.xlu1 %2283 }
 0x24b   : > { %2361 = vmatprep.mubr.f32.mxu1 %v2979_v5  ;;  %2619 = vmatprep.mubr.f32.mxu0 %v2979_v5  ;;  %v2291_v50 = vsel %vm2289_vm7, %v2284_v44, %v2286_v32  ;;  %v2807_v5 = vld [vmem:[%s3378_s3 + $0x40] sm:$0xff] }
 0x24e   : > { %v2288_v45 = vpop.permute.xlu0 %2287  ;;  %v2546_v46 = vpop.permute.xlu1 %2545 }
 0x24f   : > { %v2290_v47 = vsel %vm2289_vm7, %v2286_v32, %v2288_v45  ;;  %v2548_v49 = vsel %vm2547_vm9, %v2544_v43, %v2546_v46 }
 0x250   : > { %2297 = vmatprep.subr.mxu1 %v2290_v47  ;;  %2555 = vmatprep.subr.mxu0 %v2548_v49 }
 0x251   : > { %2298 = vmatpush1.msra.mxu1 %v2291_v50 }
 0x252   : > { %v2542_v51 = vpop.permute.xlu0 %2541  ;;  %2802 = vmatmul.mubr.msk.f32.vlgmr.msra.gmra.mrb[12].mxu1 %vm1874_vm4, %v2801_v48 }
 0x253   : > { %v2549_v9 = vsel %vm2547_vm9, %v2542_v51, %v2544_v43 }
 0x254   : > { %2556 = vmatpush1.msra.mxu0 %v2549_v9 }
 0x255   : > { %2808 = vmatmul.mubr.msk.f32.vlgmr.msra.gmra.mrb[8].mxu0 %vm1874_vm4, %v2807_v5 }
 0x25f   : > { %v2636_v63 = vpop.permute.xlu1 %2635 }
 0x311   : > { %v2103_v52 = vpop.f32.mrb[6].mxu0 }
 0x312   : > { %v2105_v53 = vpop.f32.mrb[7].mxu0  ;;  %v2110_v54 = vsel %vm3257_vm11, %v2103_v52, 0.0 }
 0x313   : > { %v2111_v56 = vsel %vm3261_vm12, %v2105_v53, 0.0 }
 0x325   : > { %v2363_v55 = vpop.f32.mrb[12].mxu1 }
 0x326   : > { %v2370_v57 = vadd.f32 %v2363_v55, %v2110_v54  ;;  %v2365_v58 = vpop.f32.mrb[13].mxu1 }
 0x327   : > { %v2371_v59 = vadd.f32 %v2365_v58, %v2111_v56 }
 0x328   : > { %v2621_v60 = vpop.f32.mrb[8].mxu0 }
 0x329   : > { %v2628_v61 = vsel %vm3269_vm14, %v2621_v60, 0.0  ;;  %v2623_v62 = vpop.f32.mrb[9].mxu0 }
 0x32a   : > { %v2630_v0 = vadd.f32 %v2628_v61, %v2370_v57  ;;  %v2629_v23 = vsel %vm3273_vm0, %v2623_v62, 0.0 }
 0x32b   : > { %v2631_v1 = vadd.f32 %v2629_v23, %v2371_v59 }
 0x32c   : > { %v2638_v2 = vadd.f32 %v2636_v63, %v2630_v0 }
 0x32d   : > { %v2639_v3 = vadd.f32 %v2636_v63, %v2631_v1 }
 0x32e   : > { %v2640_v24 = vmax.f32 %v2638_v2, 0.0 }
 0x32f   : > { %v2641_v4 = vmax.f32 %v2639_v3, 0.0 }
 0x330   : > { %2642 = vst [vmem:[%s3046_s26] sm:$0xff] %v2640_v24 }
 0x331   : > { %2643 = vst [vmem:[%s3046_s26 + $0x8] sm:$0xff] %v2641_v4 }
 0x332 PF: > { %s15_s20 = sadd.s32 1, %s2976_s20   ;;  %s3389_s18 = smov %s2972_s19 }
 0x333   : > { %p12_p5 = scmp.ge.s32.totalorder %s15_s20, 4   ;;  %s3390_s19 = smov %s3392_s21 }
 0x335   :  { %14 = sbr.rel (!%p12_p5) target bundleno = 2 (0x2), region = 136 }

</bundles_post_ra>
